<compile_context>
chip_gen: v7x
topology: tpu7x:2x2x1
jax: 0.10.0
libtpu: 0.0.40
codegen_flags: <defaults>
</compile_context>

<pallas_src>
import functools

import jax
import jax.numpy as jnp
from jax.experimental import pallas as pl
from jax.experimental.pallas import tpu as pltpu


def _bn_stats_kernel(x_ref, sum_ref, sumsq_ref):
    """Single-pass per-channel sum and sum-of-squares over the batch grid."""
    @pl.when(pl.program_id(0) == 0)
    def _():
        sum_ref[...] = jnp.zeros_like(sum_ref)
        sumsq_ref[...] = jnp.zeros_like(sumsq_ref)

    x = x_ref[0].astype(jnp.float32)                     # (Cin, HW)
    sum_ref[...] += jnp.sum(x, axis=1, keepdims=True)
    sumsq_ref[...] += jnp.sum(x * x, axis=1, keepdims=True)


def _basic_block_kernel(x_ref, scale_ref, shift_ref, w_ref, out_ref, *, H, W,
                        matmul_dtype, fuse_im2col):
    # x_ref:     (B_tile, Cin, HW)       batch tile, channels on sublanes
    # scale_ref: (Cin, 1)                folded BN scale = gamma / sqrt(var+eps)
    # shift_ref: (Cin, 1)                folded BN shift = beta - mean * scale
    # w_ref:     (Cout, 9*Cin)  if fuse_im2col else (9, Cout, Cin)
    # out_ref:   (B_tile, Cin+Cout, HW)  concat([x, conv_out]) written directly
    B, Cin, HW = x_ref.shape
    Cout = out_ref.shape[1] - Cin

    scale = scale_ref[...]
    shift = shift_ref[...]

    # Padding masks (built once per grid step, shared across the batch tile).
    pos = jax.lax.broadcasted_iota(jnp.int32, (1, HW), 1)
    yy = (pos % (H * W)) // W
    xx = pos % W
    y_ok = {-1: yy >= 1, 1: yy < H - 1}
    x_ok = {-1: xx >= 1, 1: xx < W - 1}

    for b in range(B):
        x = x_ref[b]                                             # (Cin, HW) f32
        # Folded BatchNorm (affine) + ReLU on the VPU.
        act = jnp.maximum(x * scale + shift, 0.0)
        # Cast ONCE before the 9-tap loop (halves tap VMEM/vreg traffic in bf16).
        # Note: on v5e (no bf16 VALU) the per-tap select runs on packed data;
        # keep matmul_dtype=f32 there if the masking VPU cost ever matters.
        act_m = act.astype(matmul_dtype)

        taps = []
        acc = None
        for dy in (-1, 0, 1):
            for dx in (-1, 0, 1):
                s = dy * W + dx
                if s == 0:
                    tap = act_m
                else:
                    # tap[:, p] == act_m[:, (p + s) mod HW]; wrapped lanes are
                    # exactly the padded positions and get zeroed below.
                    tap = pltpu.roll(act_m, shift=(-s) % HW, axis=1)
                mask = None
                if dy != 0:
                    mask = y_ok[dy]
                if dx != 0:
                    mask = x_ok[dx] if mask is None else (mask & x_ok[dx])
                if mask is not None:
                    tap = jnp.where(mask, tap, 0.0)
                if fuse_im2col:
                    taps.append(tap)
                else:
                    t = (dy + 1) * 3 + (dx + 1)
                    d = jnp.dot(w_ref[t], tap,
                                preferred_element_type=jnp.float32)
                    acc = d if acc is None else acc + d

        if fuse_im2col:
            # Small Cin: one fused MXU matmul (Cout, 9*Cin) @ (9*Cin, HW).
            patches = jnp.concatenate(taps, axis=0)              # (9*Cin, HW)
            conv = jnp.dot(w_ref[...], patches,
                           preferred_element_type=jnp.float32)   # (Cout, HW)
        else:
            # Large Cin: 9 accumulated K=Cin dots, no materialized im2col.
            conv = acc

        # Lane-dense stores of both halves of the channel concat.
        out_ref[b, :Cin, :] = x.astype(out_ref.dtype)
        out_ref[b, Cin:, :] = conv.astype(out_ref.dtype)


def basic_block_forward(x_nchw, gamma, beta, conv_w, eps=1e-5,
                        matmul_dtype=jnp.float32, batch_tile=1,
                        fuse_im2col=None):
    """BasicBlock forward. x_nchw: (N, Cin, H, W); conv_w: (Cout, Cin, 3, 3).

    matmul_dtype=jnp.bfloat16 is the fast MXU path on ALL generations (v5e
    included; f32 matmuls lower to a multi-pass bf16 decomposition).  Keep f32
    only when bit-level parity with an f32 reference is required (the bf16
    input cast needs a looser tolerance).
    batch_tile images are processed per grid step; raise it so each step moves
    >=0.5 MB at production shapes while keeping the grid length >= 2.
    """
    N, Cin, H, W = x_nchw.shape
    Cout = conv_w.shape[0]
    HW = H * W
    assert N % batch_tile == 0, (N, batch_tile)
    if fuse_im2col is None:
        fuse_im2col = Cin < 64   # fused im2col only while the 9x buffer is cheap

    # Free contiguous reshape: (N, Cin, H, W) -> (N, Cin, H*W).
    x2 = x_nchw.reshape(N, Cin, HW).astype(jnp.float32)

    # --- Training-mode BatchNorm2d statistics: ONE streaming pass over x. ---
    xsum, xsumsq = pl.pallas_call(
        _bn_stats_kernel,
        out_shape=(jax.ShapeDtypeStruct((Cin, 1), jnp.float32),
                   jax.ShapeDtypeStruct((Cin, 1), jnp.float32)),
        grid_spec=pltpu.PrefetchScalarGridSpec(
            num_scalar_prefetch=0,
            grid=(N,),
            in_specs=[pl.BlockSpec((1, Cin, HW), lambda n: (n, 0, 0))],
            out_specs=[pl.BlockSpec((Cin, 1), lambda n: (0, 0)),
                       pl.BlockSpec((Cin, 1), lambda n: (0, 0))]),
        compiler_params=pltpu.CompilerParams(
            dimension_semantics=("arbitrary",)),
    )(x2)

    count = jnp.float32(N * HW)
    mean = xsum[:, 0] / count
    var = jnp.maximum(xsumsq[:, 0] / count - mean * mean, 0.0)  # biased var
    g = gamma.astype(jnp.float32)
    inv_std = jax.lax.rsqrt(var + eps)
    scale = (g * inv_std).reshape(Cin, 1)
    shift = (beta.astype(jnp.float32) - mean * g * inv_std).reshape(Cin, 1)

    # --- Conv weights: layout per path, cast once in the wrapper. ---
    if fuse_im2col:
        # OIHW -> (Cout, 9*Cin); column order (ky*3+kx)*Cin + ci matches im2col.
        w_k = jnp.transpose(conv_w, (0, 2, 3, 1)).reshape(Cout, 9 * Cin)
        w_spec = pl.BlockSpec((Cout, 9 * Cin), lambda n: (0, 0))
    else:
        # OIHW -> (9, Cout, Cin); tap t = ky*3+kx.
        w_k = jnp.transpose(conv_w, (2, 3, 0, 1)).reshape(9, Cout, Cin)
        w_spec = pl.BlockSpec((9, Cout, Cin), lambda n: (0, 0, 0))
    w_k = w_k.astype(matmul_dtype)

    kernel = functools.partial(_basic_block_kernel, H=H, W=W,
                               matmul_dtype=matmul_dtype,
                               fuse_im2col=fuse_im2col)

    out2 = pl.pallas_call(
        kernel,
        out_shape=jax.ShapeDtypeStruct((N, Cin + Cout, HW), x_nchw.dtype),
        grid_spec=pltpu.PrefetchScalarGridSpec(
            num_scalar_prefetch=0,
            grid=(N // batch_tile,),   # independent batch tiles; megacore-able
            in_specs=[
                pl.BlockSpec((batch_tile, Cin, HW), lambda n: (n, 0, 0)),
                pl.BlockSpec((Cin, 1), lambda n: (0, 0)),
                pl.BlockSpec((Cin, 1), lambda n: (0, 0)),
                w_spec,
            ],
            out_specs=pl.BlockSpec((batch_tile, Cin + Cout, HW),
                                   lambda n: (n, 0, 0)),
        ),
        compiler_params=pltpu.CompilerParams(
            dimension_semantics=("parallel",)),
    )(x2, scale, shift, w_k)

    # Free reshape back to NCHW; channel concat already done inside the kernel.
    # TODO(synk): dropout path skipped — dropRate defaults to 0.0 (no-op here).
    return out2.reshape(N, Cin + Cout, H, W)


def reference_forward(x, gamma, beta, w, eps=1e-5):
    mean = x.mean(axis=(0, 2, 3), keepdims=True)
    var = x.var(axis=(0, 2, 3), keepdims=True)
    xn = (x - mean) / jnp.sqrt(var + eps)
    xn = xn * gamma.reshape(1, -1, 1, 1) + beta.reshape(1, -1, 1, 1)
    act = jnp.maximum(xn, 0.0)
    out = jax.lax.conv_general_dilated(
        act, w, window_strides=(1, 1), padding="SAME",
        dimension_numbers=("NCHW", "OIHW", "NCHW"))
    return jnp.concatenate([x, out], axis=1)


if __name__ == "__main__":
    N, in_planes, out_planes, H, W = 2, 4, 8, 16, 16

    key = jax.random.PRNGKey(0)
    kx, kw = jax.random.split(key)

    x = jax.random.normal(kx, (N, in_planes, H, W), dtype=jnp.float32)
    # Deterministic, slightly non-trivial BN affine params to exercise folding.
    gamma = 1.0 + 0.1 * jnp.arange(in_planes, dtype=jnp.float32)
    beta = 0.05 * jnp.arange(in_planes, dtype=jnp.float32)
    # Conv weight ~ N(0, sqrt(2 / fan_in)), no bias (PyTorch WRN init).
    conv_w = jax.random.normal(kw, (out_planes, in_planes, 3, 3),
                               dtype=jnp.float32) * (2.0 / (9 * in_planes)) ** 0.5

    y_ref = jax.block_until_ready(reference_forward(x, gamma, beta, conv_w))

    # Path 1: fused im2col matmul (auto-selected for small Cin), 1 image / step.
    y = jax.block_until_ready(basic_block_forward(x, gamma, beta, conv_w))
    assert y.shape == (N, in_planes + out_planes, H, W), y.shape
    err = float(jnp.max(jnp.abs(y - y_ref)))
    assert jnp.allclose(y, y_ref, atol=2e-4, rtol=2e-4), err

    # Path 2: accumulated-9-dot path (used for large Cin) + batch_tile=2.
    y2 = jax.block_until_ready(basic_block_forward(
        x, gamma, beta, conv_w, batch_tile=2, fuse_im2col=False))
    err2 = float(jnp.max(jnp.abs(y2 - y_ref)))
    assert jnp.allclose(y2, y_ref, atol=2e-4, rtol=2e-4), err2

    print("KERNEL_OK")
</pallas_src>

<mosaic_0001>
module attributes {stable_mosaic.version = 11 : i64} {
  func.func @_bn_stats_kernel(%arg0: i32, %arg1: memref<1x4x256xf32, #tpu.memory_space<vmem>>, %arg2: memref<4x1xf32, #tpu.memory_space<vmem>>, %arg3: memref<4x1xf32, #tpu.memory_space<vmem>>) attributes {dimension_semantics = [#tpu.dimension_semantics<arbitrary>], iteration_bounds = array<i64: 2>, scalar_prefetch = 0 : i64, scratch_operands = 0 : i64, tpu.core_type = #tpu.core_type<tc>, window_params = [{transform_indices = @transform_0, window_bounds = array<i64: 1, 4, 256>}, {pipeline_mode = #tpu.pipeline_mode<synchronous>, transform_indices = @transform_1, window_bounds = array<i64: 4, 1>}, {pipeline_mode = #tpu.pipeline_mode<synchronous>, transform_indices = @transform_2, window_bounds = array<i64: 4, 1>}]} {
    %c0_i32 = arith.constant 0 : i32
    %0 = arith.cmpi eq, %arg0, %c0_i32 : i32
    %1 = arith.extui %0 : i1 to i32
    %c0_i32_0 = arith.constant 0 : i32
    %2 = arith.cmpi ne, %1, %c0_i32_0 : i32
    scf.if %2 {
      %cst_12 = arith.constant 0.000000e+00 : f32
      %16 = vector.broadcast %cst_12 : f32 to vector<4x1xf32>
      %c0_13 = arith.constant 0 : index
      %c0_14 = arith.constant 0 : index
      %17 = vector.load %arg2[%c0_13, %c0_14] : memref<4x1xf32, #tpu.memory_space<vmem>>, vector<4x1xf32>
      tpu.vector_store %arg2[%c0_13, %c0_14], %16 {strides = array<i32>} : memref<4x1xf32, #tpu.memory_space<vmem>>, vector<4x1xf32>,
      %cst_15 = arith.constant 0.000000e+00 : f32
      %18 = vector.broadcast %cst_15 : f32 to vector<4x1xf32>
      %c0_16 = arith.constant 0 : index
      %c0_17 = arith.constant 0 : index
      %19 = vector.load %arg3[%c0_16, %c0_17] : memref<4x1xf32, #tpu.memory_space<vmem>>, vector<4x1xf32>
      tpu.vector_store %arg3[%c0_16, %c0_17], %18 {strides = array<i32>} : memref<4x1xf32, #tpu.memory_space<vmem>>, vector<4x1xf32>,
    } else {
    }
    %c0 = arith.constant 0 : index
    %c0_1 = arith.constant 0 : index
    %c0_2 = arith.constant 0 : index
    %3 = vector.load %arg1[%c0, %c0_1, %c0_2] : memref<1x4x256xf32, #tpu.memory_space<vmem>>, vector<1x4x256xf32>
    %4 = vector.shape_cast %3 : vector<1x4x256xf32> to vector<4x256xf32>
    %c0_3 = arith.constant 0 : index
    %c0_4 = arith.constant 0 : index
    %5 = vector.load %arg2[%c0_3, %c0_4] : memref<4x1xf32, #tpu.memory_space<vmem>>, vector<4x1xf32>
    %cst = arith.constant dense<0.000000e+00> : vector<4xf32>
    %6 = vector.multi_reduction <add>, %4, %cst [1] : vector<4x256xf32> to vector<4xf32>
    %7 = vector.shape_cast %6 : vector<4xf32> to vector<4x1xf32>
    %8 = arith.addf %5, %7 : vector<4x1xf32>
    %c0_5 = arith.constant 0 : index
    %c0_6 = arith.constant 0 : index
    %9 = vector.load %arg2[%c0_5, %c0_6] : memref<4x1xf32, #tpu.memory_space<vmem>>, vector<4x1xf32>
    tpu.vector_store %arg2[%c0_5, %c0_6], %8 {strides = array<i32>} : memref<4x1xf32, #tpu.memory_space<vmem>>, vector<4x1xf32>,
    %c0_7 = arith.constant 0 : index
    %c0_8 = arith.constant 0 : index
    %10 = vector.load %arg3[%c0_7, %c0_8] : memref<4x1xf32, #tpu.memory_space<vmem>>, vector<4x1xf32>
    %11 = arith.mulf %4, %4 : vector<4x256xf32>
    %cst_9 = arith.constant dense<0.000000e+00> : vector<4xf32>
    %12 = vector.multi_reduction <add>, %11, %cst_9 [1] : vector<4x256xf32> to vector<4xf32>
    %13 = vector.shape_cast %12 : vector<4xf32> to vector<4x1xf32>
    %14 = arith.addf %10, %13 : vector<4x1xf32>
    %c0_10 = arith.constant 0 : index
    %c0_11 = arith.constant 0 : index
    %15 = vector.load %arg3[%c0_10, %c0_11] : memref<4x1xf32, #tpu.memory_space<vmem>>, vector<4x1xf32>
    tpu.vector_store %arg3[%c0_10, %c0_11], %14 {strides = array<i32>} : memref<4x1xf32, #tpu.memory_space<vmem>>, vector<4x1xf32>,
    return
  }
  func.func @transform_0(%arg0: i32) -> (i32, i32, i32) {
    %c0_i32 = arith.constant 0 : i32
    %c0_i32_0 = arith.constant 0 : i32
    %c0_i32_1 = arith.constant 0 : i32
    return %arg0, %c0_i32, %c0_i32_0 : i32, i32, i32
  }
  func.func @transform_1(%arg0: i32) -> (i32, i32) {
    %c0_i32 = arith.constant 0 : i32
    %c0_i32_0 = arith.constant 0 : i32
    %c0_i32_1 = arith.constant 0 : i32
    return %c0_i32, %c0_i32_0 : i32, i32
  }
  func.func @transform_2(%arg0: i32) -> (i32, i32) {
    %c0_i32 = arith.constant 0 : i32
    %c0_i32_0 = arith.constant 0 : i32
    %c0_i32_1 = arith.constant 0 : i32
    return %c0_i32, %c0_i32_0 : i32, i32
  }
}

</mosaic_0001>

<bundles_post_ra>
// kernel: tpu_custom_call.1
= control target key start
LH: loop header
LB: loop body
LE: loop exit
PB: predicated region body
PF: predicated region fallthrough
CT: control target
= control target key end

     0   :  { %8 = vsyncpa [#allocation3], 0  ;;  %s480_s0 = inlined_call_operand.hbm [shape: f32[2,4,256], index: 0, kind: input, shape index: {}]   ;;  %s481_s1 = inlined_call_operand.vmem [shape: f32[4,1], index: 1, kind: output, shape index: {0}]   ;;  %s482_s2 = inlined_call_operand.vmem [shape: f32[4,1], index: 2, kind: output, shape index: {1}]  }
   0x1   :  { %10 = vsyncpa [#allocation3 + $0x1], 0  ;;  %s359_s9 = smov 0   ;;  %s361_s10 = smov 0  }
   0x2   :  { %s363_s11 = smov 0   ;;  %s365_s12 = smov 0  }
   0x3 LB: > { %s223_s13 = sadd.s32 4294967295, %s340_s12   ;;  %s379_s14 = sadd.s32 1, %s340_s12   ;;  %s340_s12 = sphi %s365_s12, %s490_s12   ;;  %s336_s11 = sphi %s363_s11, %s489_s11   ;;  %s332_s10 = sphi %s361_s10, %s488_s10   ;;  %s328_s9 = sphi %s359_s9, %s487_s9  }
   0x4   : > { %s20_s15 = ssub.s32 %s340_s12, %s379_s14  ;;  %s23_s16 = sadd.s32 1, %s336_s11 }
   0x5   : > { %p21_p0 = scmp.eq.s32.totalorder %s20_s15, 0  ;;  %p30_p1 = scmp.ne.s32.totalorder %s336_s11, %s332_s10 }
   0x6   : > { %p31_p2 = scmp.eq.s32.totalorder %s340_s12, 0  ;;  %p36_p3 = scmp.ne.s32.totalorder %s332_s10, %s328_s9 }
   0x7   : > { %s389_s17 = scalar_select %p21_p0, %s336_s11, %s23_s16  }
   0x8   : > { %p32_p4 = por %p31_p2, %p30_p1  ;;  %p37_p5 = scmp.eq.s32.totalorder %s223_s13, 0 }
   0x9   : > { %p241_p6 = scmp.lt.s32.totalorder %s340_s12, 2  ;;  %s102_s19 = sand.u32 1, %s336_s11  }
   0xa   : > { %p394_p7 = por %p37_p5, %p36_p3  ;;  %s226_s20 = sshll.u32 %s102_s19, 3 }
   0xb   : > { %s234_s21 = sshll.u32 %s340_s12, 7  ;;  %s106_s25 = scalar_lea.vmem [#allocation2], %s226_s20 }
   0xc   : > { %s403_s24 = scalar_lea.hbm %s480_s0, %s234_s21  ;;  %s114_s26 = sshll.u32 %s106_s25, 4  ;;  %s405_s26 = int_to_ptr.vmem [resolvable:$true] %s114_s26 }
   0xd   : > { %p407_p8 = pnand %p241_p6, %p32_p4  ;;  %s103_s28 = scalar_lea.sflag [#allocation3], %s102_s19 }
   0xe   : > { %s276_s29 = scalar_lea.hbm %s403_s24, 128  ;;  %s281_s4 = scalar_lea.hbm %s480_s0, 256 }
   0xf   : > { %p277_p11 = scmp.ne.s32.totalorder %s403_s24, %s276_s29  ;;  %p278_p12 = pneg %p407_p8 }
  0x10   : > { %p282_p1 = scmp.lt.u32.totalorder %s403_s24, %s480_s0  ;;  %p283_p2 = scmp.lt.u32.totalorder %s281_s4, %s276_s29 }
  0x11   : > { %p279_p13 = pnand %p278_p12, %p277_p11  ;;  %p285_p4 = scmp.lt.u32.totalorder %s276_s29, %s403_s24 }
  0x12   : > { %p284_p3 = por %p283_p2, %p282_p1 }
  0x13   : > { %p280_p0 = pneg %p279_p13 }
  0x14   : > { %p286_p5 = por %p285_p4, %p284_p3 }
  0x16   : > { %p287_p6 = pnand %p286_p5, %p280_p0 }
  0x18   : > { %290 = shalt.err (!%p287_p6)
}
  0x19   : > { %s291_s7 = scalar_lea.vmem %s405_s26, 128  ;;  %s342_s8 = smov [#allocation2]  }
  0x1a   : > { %p292_p11 = scmp.ne.s32.totalorder %s405_s26, %s291_s7  ;;  %s296_s9 = sshll.u32 %s342_s8, 4  ;;  %s297_s9 = int_to_ptr.vmem [resolvable:$false] %s296_s9 }
  0x1b   : > { %s298_s15 = scalar_lea.vmem %s297_s9, 256  ;;  %p299_p10 = scmp.lt.s32.totalorder %s405_s26, %s297_s9 }
  0x1c   : > { %p294_p13 = pnand %p292_p11, %p278_p12  ;;  %p300_p1 = scmp.lt.s32.totalorder %s298_s15, %s291_s7 }
  0x1e   : > { %p295_p9 = pneg %p294_p13  ;;  %p301_p2 = por %p300_p1, %p299_p10 }
  0x20   : > { %p302_p3 = pnand %p301_p2, %p295_p9 }
  0x22   : > { %305 = shalt.err (!%p302_p3)
}
  0x23   : > { %240 = dma.hbm_to_vmem [thread:$0]  (!%p407_p8), %s403_s24, 128, %s405_s26, %s103_s28  }
  0x24   : > { %p485_p0 = scmp.lt.s32.totalorder %s340_s12, 3  ;;  %p486_p4 = scmp.ge.s32.totalorder %s340_s12, 1 }
  0x26   : > { %p120_p12 = pnand %p486_p4, %p485_p0 }
  0x27   : > { %s125_s16 = sand.u32 (!%p120_p12), 1, %s332_s10  }
  0x28   : > { %123 = sbr.rel (%p120_p12) target bundleno = 212 (0xd4), region = 24  ;;  %s230_s19 = sshll.u32 (!%p120_p12), %s125_s16, 3 }
  0x29   : > { %s126_s20 = scalar_lea.sflag (!%p120_p12), [#allocation3], %s125_s16  ;;  %s129_s21 = scalar_lea.vmem (!%p120_p12), [#allocation2], %s230_s19 }
  0x2f   : > { %323 = dma.done.wait (%p394_p7), %s126_s20, 128  }
  0x30   : > { %325 = vsyncadd (%p394_p7), %s126_s20, 4294967168  ;;  %p231_p9 = scmp.ne.s32.totalorder %s223_s13, 0 }
  0x31   : > { %vm149_vm0 = vcmask (!%p231_p9), 3072   ;;  %v343_v0 = vmov (!%p231_p9), 0.0  }
  0x32   : > { %148 = sbr.rel (%p231_p9) target bundleno = 57 (0x39), region = 32  ;;  %150 = vst.msk [vmem:[%s481_s1] sm:$0xf] (!%p231_p9), %vm149_vm0, %v343_v0  ;;  %151 = vst.msk [vmem:[%s482_s2] sm:$0xf] (!%p231_p9), %vm149_vm0, %v343_v0 }
  0x39 PF: > { %v152_v1 = vld [vmem:[%s129_s21] sm:$0xff]  ;;  %vm157_vm1 = vcmask 1043456   ;;  %vm164_vm2 = vcmask 3072  }
  0x3a   : > { %v155_v2 = vcombine.high %v152_v1, %v152_v1  ;;  %v158_v3 = vsel %vm157_vm1, %v152_v1, 0.0  ;;  %v167_v4 = vmul.f32 %v152_v1, %v152_v1  ;;  %v153_v11 = vld [vmem:[%s481_s1] sm:$0xf] }
  0x3b   : > { %v166_v14 = vld [vmem:[%s482_s2] sm:$0xf] }
  0x3c   : > { %v159_v5 = vsel %vm157_vm1, %v155_v2, 0.0  ;;  %v169_v6 = vcombine.high %v167_v4, %v167_v4  ;;  %v171_v7 = vsel %vm157_vm1, %v167_v4, 0.0 }
  0x3d   : > { %v160_v8 = vadd.f32 %v159_v5, %v158_v3 }
  0x3e   : > { %v172_v9 = vsel %vm157_vm1, %v169_v6, 0.0 }
  0x3f   : > { %161 = vadd.xlane.f32.xlu0 %v160_v8  ;;  %v173_v10 = vadd.f32 %v172_v9, %v171_v7 }
  0x43   : > { %174 = vadd.xlane.f32.xlu0 %v173_v10 }
  0xcc   : > { %v162_v12 = vpop.xlane.xlu0 %161 }
  0xcd   : > { %v163_v13 = vadd.f32 %v162_v12, %v153_v11 }
  0xcf   : > { %165 = vst.msk [vmem:[%s481_s1] sm:$0xf] %vm164_vm2, %v163_v13 }
  0xd0   : > { %v175_v15 = vpop.xlane.xlu0 %174 }
  0xd1   : > { %v176_v16 = vadd.f32 %v175_v15, %v166_v14 }
  0xd3   : > { %177 = vst.msk [vmem:[%s482_s2] sm:$0xf] %vm164_vm2, %v176_v16 }
  0xd4 PF: > { %p13_p7 = scmp.ge.s32.totalorder %s379_s14, 4   ;;  %s487_s9 = smov %s332_s10 }
  0xd5   : > { %s488_s10 = smov %s336_s11  ;;  %s489_s11 = smov %s389_s17 }
  0xd6   : > { %s490_s12 = smov %s379_s14  ;;  %15 = sbr.rel (!%p13_p7) target bundleno = 3 (0x3), region = 72 }
  0xdd   :  { %195 = vsyncpa [#allocation3], 1 }
  0xde   :  { %197 = vsyncpa [#allocation3 + $0x1], 1 }

</bundles_post_ra>
